<compile_context>
chip_gen: v7x
topology: tpu7x:2x2x1
jax: 0.10.0
libtpu: 0.0.40
codegen_flags: <defaults>
</compile_context>

<pallas_src>
import jax
import jax.numpy as jnp
from jax.experimental import pallas as pl
from jax.experimental.pallas import tpu as pltpu


def _make_kernel(n_total):
    inv_n = 1.0 / float(n_total)

    def kernel(r_ref, mem_ref, uw_ref, ww_ref, o_ref, rsum_ref):
        # r_ref:    (tn, tm, D)  one batch-slab of one memory-row tile
        # mem_ref:  (tm, D)
        # uw_ref:   (D, D)   U_psi weight, laid out so x @ uw == U_psi(x)
        # ww_ref:   (D, D)   W_psi weight, same layout
        # o_ref:    (tm, D)
        # rsum_ref: (tm, D)  f32 running sum over the batch axis
        n = pl.program_id(1)

        @pl.when(n == 0)
        def _():
            rsum_ref[...] = jnp.zeros_like(rsum_ref)

        # Accumulate the batch sum for this memory-row tile (r read once).
        rsum_ref[...] += jnp.sum(r_ref[...].astype(jnp.float32), axis=0)

        @pl.when(n == pl.num_programs(1) - 1)
        def _():
            r_mean = rsum_ref[...] * inv_n                         # (tm, D)
            mem = mem_ref[...].astype(jnp.float32)                 # (tm, D)
            psi = (
                jnp.dot(mem, uw_ref[...].astype(jnp.float32),
                        preferred_element_type=jnp.float32)
                + jnp.dot(r_mean, ww_ref[...].astype(jnp.float32),
                          preferred_element_type=jnp.float32)
            )                                                      # (tm, D)
            out = (1.0 - psi) * mem + psi * r_mean
            o_ref[...] = out.astype(o_ref.dtype)

    return kernel


def _pick_tile(dim, target, align):
    """Largest align-multiple divisor of `dim` that is <= target (else dim)."""
    if dim <= target:
        return dim
    t = (target // align) * align
    while t >= align:
        if dim % t == 0:
            return t
        t -= align
    return dim


def u_w_psi_forward(r, memory, u_w, w_w, *, block_m=256, block_n=8):
    """JAX/Pallas equivalent of U_W_psi(d_model).forward((r, memory)).

    r:       (N, M, D)    memory: (M, D)
    u_w/w_w: (D, D) weights laid out for `x @ w` (i.e. the transpose of the
             PyTorch nn.Linear weight), bias-free.
    Returns (M, D) in memory.dtype.
    """
    N, M, D = r.shape
    if memory.shape != (M, D):
        raise ValueError(f"memory must be {(M, D)}, got {memory.shape}")
    if u_w.shape != (D, D) or w_w.shape != (D, D):
        raise ValueError(f"weights must be {(D, D)}")

    # Tile the memory-row axis (8-aligned, lane dim D kept full) and the batch
    # (reduction) axis. Small shapes collapse to a single grid step.
    tm = _pick_tile(M, block_m, 8)
    tn = _pick_tile(N, block_n, 1)
    grid = (M // tm, N // tn)

    kernel = _make_kernel(N)

    return pl.pallas_call(
        kernel,
        out_shape=jax.ShapeDtypeStruct((M, D), memory.dtype),
        grid=grid,
        in_specs=[
            pl.BlockSpec((tn, tm, D), lambda i, n: (n, i, 0)),   # r
            pl.BlockSpec((tm, D), lambda i, n: (i, 0)),          # memory
            pl.BlockSpec((D, D), lambda i, n: (0, 0)),           # U_psi weight
            pl.BlockSpec((D, D), lambda i, n: (0, 0)),           # W_psi weight
        ],
        out_specs=pl.BlockSpec((tm, D), lambda i, n: (i, 0)),
        scratch_shapes=[pltpu.VMEM((tm, D), jnp.float32)],
        compiler_params=pltpu.CompilerParams(
            dimension_semantics=("parallel", "arbitrary")),
    )(r, memory, u_w, w_w)


if __name__ == "__main__":
    key = jax.random.PRNGKey(0)
    k_r, k_m, k_u, k_w = jax.random.split(key, 4)

    # Small shapes implied by the forward: r=(N, M, D), memory=(M, D).
    # D chosen lane-dense (128).
    n_batch, n_memory, d_model = 4, 16, 128
    r = jax.random.normal(k_r, (n_batch, n_memory, d_model), dtype=jnp.float32)
    memory = jax.random.normal(k_m, (n_memory, d_model), dtype=jnp.float32)
    # nn.Linear(d_model, d_model, bias=False) computes x @ W.T; we store the
    # already-transposed weights so the kernel computes x @ u_w / x @ w_w.
    u_w = jax.random.normal(k_u, (d_model, d_model), dtype=jnp.float32) / jnp.sqrt(d_model)
    w_w = jax.random.normal(k_w, (d_model, d_model), dtype=jnp.float32) / jnp.sqrt(d_model)

    y = u_w_psi_forward(r, memory, u_w, w_w)
    y = jax.block_until_ready(y)

    # Pure-JAX reference, same math as the PyTorch module.
    r_mean = r.mean(axis=0)
    psi = memory @ u_w + r_mean @ w_w
    ref = (1.0 - psi) * memory + psi * r_mean

    assert y.shape == ref.shape
    assert y.dtype == ref.dtype
    assert bool(jnp.allclose(y, ref, atol=1e-4, rtol=1e-4)), "mismatch vs reference"

    print("KERNEL_OK")
</pallas_src>

<mosaic_0001>
module attributes {stable_mosaic.version = 11 : i64} {
  func.func @kernel(%arg0: i32, %arg1: i32, %arg2: memref<4x16x128xf32, #tpu.memory_space<vmem>>, %arg3: memref<16x128xf32, #tpu.memory_space<vmem>>, %arg4: memref<128x128xf32, #tpu.memory_space<vmem>>, %arg5: memref<128x128xf32, #tpu.memory_space<vmem>>, %arg6: memref<16x128xf32, #tpu.memory_space<vmem>>, %arg7: memref<16x128xf32, #tpu.memory_space<vmem>>) attributes {dimension_semantics = [#tpu.dimension_semantics<parallel>, #tpu.dimension_semantics<arbitrary>], iteration_bounds = array<i64: 1, 1>, scalar_prefetch = 0 : i64, scratch_operands = 1 : i64, tpu.core_type = #tpu.core_type<tc>, window_params = [{transform_indices = @transform_0, window_bounds = array<i64: 4, 16, 128>}, {transform_indices = @transform_1, window_bounds = array<i64: 16, 128>}, {pipeline_mode = #tpu.pipeline_mode<synchronous>, transform_indices = @transform_2, window_bounds = array<i64: 128, 128>}, {pipeline_mode = #tpu.pipeline_mode<synchronous>, transform_indices = @transform_3, window_bounds = array<i64: 128, 128>}, {transform_indices = @transform_4, window_bounds = array<i64: 16, 128>}]} {
    %c0_i32 = arith.constant 0 : i32
    %0 = arith.cmpi eq, %arg1, %c0_i32 : i32
    %1 = arith.extui %0 : i1 to i32
    %c0_i32_0 = arith.constant 0 : i32
    %2 = arith.cmpi ne, %1, %c0_i32_0 : i32
    scf.if %2 {
      %cst_9 = arith.constant 0.000000e+00 : f32
      %11 = vector.broadcast %cst_9 : f32 to vector<16x128xf32>
      %c0_10 = arith.constant 0 : index
      %c0_11 = arith.constant 0 : index
      %12 = vector.load %arg7[%c0_10, %c0_11] : memref<16x128xf32, #tpu.memory_space<vmem>>, vector<16x128xf32>
      tpu.vector_store %arg7[%c0_10, %c0_11], %11 {strides = array<i32>} : memref<16x128xf32, #tpu.memory_space<vmem>>, vector<16x128xf32>,
    } else {
    }
    %c0 = arith.constant 0 : index
    %c0_1 = arith.constant 0 : index
    %3 = vector.load %arg7[%c0, %c0_1] : memref<16x128xf32, #tpu.memory_space<vmem>>, vector<16x128xf32>
    %c0_2 = arith.constant 0 : index
    %c0_3 = arith.constant 0 : index
    %c0_4 = arith.constant 0 : index
    %4 = vector.load %arg2[%c0_2, %c0_3, %c0_4] : memref<4x16x128xf32, #tpu.memory_space<vmem>>, vector<4x16x128xf32>
    %cst = arith.constant dense<0.000000e+00> : vector<16x128xf32>
    %5 = vector.multi_reduction <add>, %4, %cst [0] : vector<4x16x128xf32> to vector<16x128xf32>
    %6 = arith.addf %3, %5 : vector<16x128xf32>
    %c0_5 = arith.constant 0 : index
    %c0_6 = arith.constant 0 : index
    %7 = vector.load %arg7[%c0_5, %c0_6] : memref<16x128xf32, #tpu.memory_space<vmem>>, vector<16x128xf32>
    tpu.vector_store %arg7[%c0_5, %c0_6], %6 {strides = array<i32>} : memref<16x128xf32, #tpu.memory_space<vmem>>, vector<16x128xf32>,
    %c0_i32_7 = arith.constant 0 : i32
    %8 = arith.cmpi eq, %arg1, %c0_i32_7 : i32
    %9 = arith.extui %8 : i1 to i32
    %c0_i32_8 = arith.constant 0 : i32
    %10 = arith.cmpi ne, %9, %c0_i32_8 : i32
    scf.if %10 {
      %c0_9 = arith.constant 0 : index
      %c0_10 = arith.constant 0 : index
      %11 = vector.load %arg7[%c0_9, %c0_10] : memref<16x128xf32, #tpu.memory_space<vmem>>, vector<16x128xf32>
      %cst_11 = arith.constant 2.500000e-01 : f32
      %12 = vector.broadcast %cst_11 : f32 to vector<16x128xf32>
      %13 = arith.mulf %11, %12 : vector<16x128xf32>
      %c0_12 = arith.constant 0 : index
      %c0_13 = arith.constant 0 : index
      %14 = vector.load %arg3[%c0_12, %c0_13] : memref<16x128xf32, #tpu.memory_space<vmem>>, vector<16x128xf32>
      %c0_14 = arith.constant 0 : index
      %c0_15 = arith.constant 0 : index
      %15 = vector.load %arg4[%c0_14, %c0_15] : memref<128x128xf32, #tpu.memory_space<vmem>>, vector<128x128xf32>
      %cst_16 = arith.constant dense<0.000000e+00> : vector<16x128xf32>
      %16 = tpu.matmul %14, %15, %cst_16 {dimension_numbers = #tpu.dot_dimension_numbers<[1], [0], [0], [1], [0, 0, 1, 1], [], []>} : vector<16x128xf32>, vector<128x128xf32>, vector<16x128xf32> -> vector<16x128xf32>
      %c0_17 = arith.constant 0 : index
      %c0_18 = arith.constant 0 : index
      %17 = vector.load %arg5[%c0_17, %c0_18] : memref<128x128xf32, #tpu.memory_space<vmem>>, vector<128x128xf32>
      %cst_19 = arith.constant dense<0.000000e+00> : vector<16x128xf32>
      %18 = tpu.matmul %13, %17, %cst_19 {dimension_numbers = #tpu.dot_dimension_numbers<[1], [0], [0], [1], [0, 0, 1, 1], [], []>} : vector<16x128xf32>, vector<128x128xf32>, vector<16x128xf32> -> vector<16x128xf32>
      %19 = arith.addf %16, %18 : vector<16x128xf32>
      %cst_20 = arith.constant 1.000000e+00 : f32
      %20 = vector.broadcast %cst_20 : f32 to vector<16x128xf32>
      %21 = arith.subf %20, %19 : vector<16x128xf32>
      %22 = arith.mulf %21, %14 : vector<16x128xf32>
      %23 = arith.mulf %19, %13 : vector<16x128xf32>
      %24 = arith.addf %22, %23 : vector<16x128xf32>
      %c0_21 = arith.constant 0 : index
      %c0_22 = arith.constant 0 : index
      %25 = vector.load %arg6[%c0_21, %c0_22] : memref<16x128xf32, #tpu.memory_space<vmem>>, vector<16x128xf32>
      tpu.vector_store %arg6[%c0_21, %c0_22], %24 {strides = array<i32>} : memref<16x128xf32, #tpu.memory_space<vmem>>, vector<16x128xf32>,
    } else {
    }
    return
  }
  func.func @transform_0(%arg0: i32, %arg1: i32) -> (i32, i32, i32) {
    %c0_i32 = arith.constant 0 : i32
    %c0_i32_0 = arith.constant 0 : i32
    return %arg1, %arg0, %c0_i32 : i32, i32, i32
  }
  func.func @transform_1(%arg0: i32, %arg1: i32) -> (i32, i32) {
    %c0_i32 = arith.constant 0 : i32
    %c0_i32_0 = arith.constant 0 : i32
    return %arg0, %c0_i32 : i32, i32
  }
  func.func @transform_2(%arg0: i32, %arg1: i32) -> (i32, i32) {
    %c0_i32 = arith.constant 0 : i32
    %c0_i32_0 = arith.constant 0 : i32
    %c0_i32_1 = arith.constant 0 : i32
    return %c0_i32, %c0_i32_0 : i32, i32
  }
  func.func @transform_3(%arg0: i32, %arg1: i32) -> (i32, i32) {
    %c0_i32 = arith.constant 0 : i32
    %c0_i32_0 = arith.constant 0 : i32
    %c0_i32_1 = arith.constant 0 : i32
    return %c0_i32, %c0_i32_0 : i32, i32
  }
  func.func @transform_4(%arg0: i32, %arg1: i32) -> (i32, i32) {
    %c0_i32 = arith.constant 0 : i32
    %c0_i32_0 = arith.constant 0 : i32
    return %arg0, %c0_i32 : i32, i32
  }
}

</mosaic_0001>

<bundles_post_ra>
// kernel: tpu_custom_call.1
= control target key start
LH: loop header
LB: loop body
LE: loop exit
PB: predicated region body
PF: predicated region fallthrough
CT: control target
= control target key end

     0   :  { %9 = vsyncpa [#allocation4], 0  ;;  %s741_s0 = inlined_call_operand.hbm [shape: f32[4,16,128], index: 0, kind: input, shape index: {}]   ;;  %s742_s1 = inlined_call_operand.hbm [shape: f32[16,128], index: 1, kind: input, shape index: {}]   ;;  %s743_s2 = inlined_call_operand.hbm [shape: f32[128,128], index: 2, kind: input, shape index: {}]   ;;  %s744_s3 = inlined_call_operand.hbm [shape: f32[128,128], index: 3, kind: input, shape index: {}]   ;;  %s745_s4 = inlined_call_operand.hbm [shape: f32[16,128], index: 4, kind: output, shape index: {}]  }
   0x1   :  { %10 = vsyncpa [#allocation7], 0 }
   0x2   :  { %11 = vsyncpa [#allocation10], 0 }
   0x3   :  { %12 = vsyncpa [#allocation5], 0  ;;  %s616_s15 = smov [#allocation6]   ;;  %s617_s17 = smov [#allocation3]  }
   0x4   :  { %s30_s16 = sshll.u32 %s616_s15, 4  ;;  %s18_s18 = sshll.u32 %s617_s17, 4  ;;  %s31_s16 = int_to_ptr.vmem [resolvable:$true] %s30_s16  ;;  %s648_s18 = int_to_ptr.vmem [resolvable:$true] %s18_s18 }
   0x5   :  { %s498_s21 = scalar_lea.hbm %s742_s1, 256 }
   0x6   :  { %p499_p0 = scmp.ne.s32.totalorder %s742_s1, %s498_s21  ;;  %p502_p1 = scmp.lt.u32.totalorder %s498_s21, %s742_s1 }
   0x8   :  { %p504_p2 = pnand %p502_p1, %p499_p0 }
   0xa   :  { %507 = shalt.err (!%p504_p2)
}
   0xb   :  { %s508_s26 = scalar_lea.vmem %s31_s16, 256  ;;  %p513_p4 = scmp.lt.s32.totalorder %s31_s16, %s31_s16 }
   0xc   :  { %p509_p3 = scmp.ne.s32.totalorder %s31_s16, %s508_s26  ;;  %p514_p5 = scmp.lt.s32.totalorder %s508_s26, %s508_s26 }
   0xe   :  { %p515_p6 = por %p514_p5, %p513_p4 }
  0x10   :  { %p516_p7 = pnand %p515_p6, %p509_p3 }
  0x12   :  { %519 = shalt.err (!%p516_p7)
}
  0x13   :  { %s618_s27 = smov 128   ;;  %s619_s28 = smov 8  }
  0x14   :  { %36 = dma.hbm_to_vmem [thread:$0]  %s742_s1, 256, %s31_s16, [#allocation7], %s618_s27, %s618_s27, %s619_s28  }
  0x15   :  { %s520_s7 = scalar_lea.hbm %s741_s0, 1024 }
  0x16   :  { %p521_p8 = scmp.ne.s32.totalorder %s741_s0, %s520_s7  ;;  %p524_p9 = scmp.lt.u32.totalorder %s520_s7, %s741_s0 }
  0x18   :  { %p526_p10 = pnand %p524_p9, %p521_p8 }
  0x1a   :  { %529 = shalt.err (!%p526_p10)
}
  0x1b   :  { %s530_s12 = scalar_lea.vmem %s648_s18, 1024  ;;  %p535_p12 = scmp.lt.s32.totalorder %s648_s18, %s648_s18 }
  0x1c   :  { %p531_p11 = scmp.ne.s32.totalorder %s648_s18, %s530_s12  ;;  %p536_p13 = scmp.lt.s32.totalorder %s530_s12, %s530_s12 }
  0x1e   :  { %p537_p0 = por %p536_p13, %p535_p12 }
  0x20   :  { %p538_p1 = pnand %p537_p0, %p531_p11 }
  0x22   :  { %541 = shalt.err (!%p538_p1)
}
  0x23   :  { %24 = dma.hbm_to_vmem [thread:$0]  %s741_s0, 1024, %s648_s18, [#allocation4], %s618_s27, %s618_s27, %s619_s28  }
  0x24   :  { %s620_s14 = smov [#allocation8]   ;;  %s621_s16 = smov [#allocation9]  }
  0x25   :  { %s42_s15 = sshll.u32 %s620_s14, 4  ;;  %s54_s17 = sshll.u32 %s621_s16, 4  ;;  %s43_s15 = int_to_ptr.vmem [resolvable:$true] %s42_s15  ;;  %s685_s17 = int_to_ptr.vmem [resolvable:$true] %s54_s17 }
  0x26   :  { %s542_s21 = scalar_lea.hbm %s743_s2, 2048 }
  0x27   :  { %p543_p2 = scmp.ne.s32.totalorder %s743_s2, %s542_s21  ;;  %p546_p3 = scmp.lt.u32.totalorder %s542_s21, %s743_s2 }
  0x29   :  { %p548_p4 = pnand %p546_p3, %p543_p2 }
  0x2b   :  { %551 = shalt.err (!%p548_p4)
}
  0x2c   :  { %s552_s0 = scalar_lea.vmem %s43_s15, 2048  ;;  %p557_p6 = scmp.lt.s32.totalorder %s43_s15, %s43_s15 }
  0x2d   :  { %p553_p5 = scmp.ne.s32.totalorder %s43_s15, %s552_s0  ;;  %p558_p7 = scmp.lt.s32.totalorder %s552_s0, %s552_s0 }
  0x2f   :  { %p559_p8 = por %p558_p7, %p557_p6 }
  0x31   :  { %p560_p9 = pnand %p559_p8, %p553_p5 }
  0x33   :  { %563 = shalt.err (!%p560_p9)
}
  0x34   :  { %48 = dma.hbm_to_vmem [thread:$0]  %s743_s2, 2048, %s43_s15, [#allocation7], %s618_s27, %s618_s27, %s619_s28  }
  0x35   :  { %s564_s5 = scalar_lea.hbm %s744_s3, 2048 }
  0x36   :  { %p565_p10 = scmp.ne.s32.totalorder %s744_s3, %s564_s5  ;;  %p568_p11 = scmp.lt.u32.totalorder %s564_s5, %s744_s3 }
  0x38   :  { %p570_p12 = pnand %p568_p11, %p565_p10 }
  0x3a   :  { %573 = shalt.err (!%p570_p12)
}
  0x3b   :  { %s574_s10 = scalar_lea.vmem %s685_s17, 2048  ;;  %p579_p0 = scmp.lt.s32.totalorder %s685_s17, %s685_s17 }
  0x3c   :  { %p575_p13 = scmp.ne.s32.totalorder %s685_s17, %s574_s10  ;;  %p580_p1 = scmp.lt.s32.totalorder %s574_s10, %s574_s10 }
  0x3e   :  { %p581_p2 = por %p580_p1, %p579_p0 }
  0x40   :  { %p582_p3 = pnand %p581_p2, %p575_p13 }
  0x42   :  { %585 = shalt.err (!%p582_p3)
}
  0x43   :  { %60 = dma.hbm_to_vmem [thread:$0]  %s744_s3, 2048, %s685_s17, [#allocation10], %s618_s27, %s618_s27, %s619_s28  }
  0x44   :  { %608 = dma.done.wait [#allocation4], 1024  }
  0x45   :  { %609 = vsyncadd [#allocation4], 4294966272 }
  0x46   :  { %610 = dma.done.wait [#allocation7], 2304  }
  0x47   :  { %611 = vsyncadd [#allocation7], 4294964992 }
  0x48   :  { %612 = dma.done.wait [#allocation10], 2048  }
  0x49   :  { %613 = vsyncadd [#allocation10], 4294965248  ;;  %v124_v0 = vld [vmem:[#allocation9] sm:$0xff]  ;;  %v125_v1 = vld [vmem:[#allocation9 + $0x8] sm:$0xff]  ;;  %s622_s3 = smov [#allocation11]  }
  0x4a   :  { %v108_v2 = vld [vmem:[#allocation8] sm:$0xff]  ;;  %v425_v3 = vpack.c.bf16 %v125_v1, %v124_v0  ;;  %v109_v4 = vld [vmem:[#allocation8 + $0x8] sm:$0xff]  ;;  %v126_v5 = vld [vmem:[#allocation9 + $0x10] sm:$0xff]  ;;  %s305_s12 = sshll.u32 %s622_s3, 4  ;;  %s306_s12 = int_to_ptr.vmem [resolvable:$true] %s305_s12 }
  0x4b   :  { %v127_v6 = vld [vmem:[#allocation9 + $0x18] sm:$0xff]  ;;  %v457_v7 = vpack.c.bf16 %v109_v4, %v108_v2  ;;  %v110_v9 = vld [vmem:[#allocation8 + $0x10] sm:$0xff]  ;;  %v128_v11 = vld [vmem:[#allocation9 + $0x20] sm:$0xff]  ;;  %s586_s1 = scalar_lea.vmem %s306_s12, 256  ;;  %p591_p5 = scmp.lt.s32.totalorder %s306_s12, %s306_s12 }
  0x4c   :  { %v429_v8 = vpack.c.bf16 %v127_v6, %v126_v5  ;;  %v111_v10 = vld [vmem:[#allocation8 + $0x18] sm:$0xff]  ;;  %426 = vmatprep.subr.bf16.mxu1 %v425_v3  ;;  %v129_v13 = vld [vmem:[#allocation9 + $0x28] sm:$0xff]  ;;  %v112_v14 = vld [vmem:[#allocation8 + $0x20] sm:$0xff]  ;;  %p587_p4 = scmp.ne.s32.totalorder %s306_s12, %s586_s1  ;;  %p592_p6 = scmp.lt.s32.totalorder %s586_s1, %s586_s1 }
  0x4d   :  { %v461_v12 = vpack.c.bf16 %v111_v10, %v110_v9  ;;  %v113_v15 = vld [vmem:[#allocation8 + $0x28] sm:$0xff]  ;;  %458 = vmatprep.subr.bf16.mxu0 %v457_v7  ;;  %428 = vmatpush3.bf16.msra.mxu1 %v425_v3  ;;  %v433_v16 = vpack.c.bf16 %v129_v13, %v128_v11  ;;  %v130_v18 = vld [vmem:[#allocation9 + $0x30] sm:$0xff]  ;;  %v131_v19 = vld [vmem:[#allocation9 + $0x38] sm:$0xff] }
  0x4e   :  { %460 = vmatpush3.bf16.msra.mxu0 %v457_v7  ;;  %430 = vmatprep.subr.bf16.mxu1 %v429_v8  ;;  %v465_v17 = vpack.c.bf16 %v113_v15, %v112_v14  ;;  %v114_v20 = vld [vmem:[#allocation8 + $0x30] sm:$0xff]  ;;  %v115_v21 = vld [vmem:[#allocation8 + $0x38] sm:$0xff]  ;;  %v437_v22 = vpack.c.bf16 %v131_v19, %v130_v18  ;;  %v132_v23 = vld [vmem:[#allocation9 + $0x40] sm:$0xff]  ;;  %p593_p7 = por %p592_p6, %p591_p5 }
  0x4f   :  { %462 = vmatprep.subr.bf16.mxu0 %v461_v12  ;;  %v469_v24 = vpack.c.bf16 %v115_v21, %v114_v20  ;;  %v133_v25 = vld [vmem:[#allocation9 + $0x48] sm:$0xff]  ;;  %v116_v26 = vld [vmem:[#allocation8 + $0x40] sm:$0xff]  ;;  %v81_v27 = vld [vmem:[#allocation3] sm:$0xff] }
  0x50   :  { %v117_v28 = vld [vmem:[#allocation8 + $0x48] sm:$0xff]  ;;  %v83_v29 = vld [vmem:[#allocation3 + $0x10] sm:$0xff]  ;;  %v85_v30 = vld [vmem:[#allocation3 + $0x20] sm:$0xff]  ;;  %v441_v33 = vpack.c.bf16 %v133_v25, %v132_v23  ;;  %p594_p8 = pnand %p593_p7, %p587_p4 }
  0x51   :  { %432 = vmatpush3.bf16.msra.mxu1 %v429_v8  ;;  %v89_v31 = vadd.f32 %v83_v29, %v81_v27  ;;  %v722_v32 = vld [vmem:[#allocation6] sm:$0xff]  ;;  %v87_v34 = vld [vmem:[#allocation3 + $0x30] sm:$0xff]  ;;  %v473_v35 = vpack.c.bf16 %v117_v28, %v116_v26  ;;  %v135_v37 = vld [vmem:[#allocation9 + $0x58] sm:$0xff] }
  0x52   :  { %464 = vmatpush3.bf16.msra.mxu0 %v461_v12  ;;  %434 = vmatprep.subr.bf16.mxu1 %v433_v16  ;;  %v134_v36 = vld [vmem:[#allocation9 + $0x50] sm:$0xff]  ;;  %v119_v40 = vld [vmem:[#allocation8 + $0x58] sm:$0xff]  ;;  %v84_v43 = vld [vmem:[#allocation3 + $0x18] sm:$0xff] }
  0x53   :  { %466 = vmatprep.subr.bf16.mxu0 %v465_v17  ;;  %v90_v38 = vadd.f32 %v89_v31, %v85_v30  ;;  %422 = vmatprep.mubr.f32.mxu0 %v722_v32  ;;  %v118_v39 = vld [vmem:[#allocation8 + $0x50] sm:$0xff]  ;;  %v82_v42 = vld [vmem:[#allocation3 + $0x8] sm:$0xff]  ;;  %v445_v44 = vpack.c.bf16 %v135_v37, %v134_v36  ;;  %v136_v46 = vld [vmem:[#allocation9 + $0x60] sm:$0xff] }
  0x54   :  { %v477_v45 = vpack.c.bf16 %v119_v40, %v118_v39  ;;  %v137_v47 = vld [vmem:[#allocation9 + $0x68] sm:$0xff]  ;;  %v120_v49 = vld [vmem:[#allocation8 + $0x60] sm:$0xff]  ;;  %v92_v51 = vadd.f32 %v84_v43, %v82_v42  ;;  %v86_v52 = vld [vmem:[#allocation3 + $0x28] sm:$0xff] }
  0x55   :  { %436 = vmatpush3.bf16.msra.mxu1 %v433_v16  ;;  %v91_v41 = vadd.f32 %v90_v38, %v87_v34  ;;  %v121_v50 = vld [vmem:[#allocation8 + $0x68] sm:$0xff]  ;;  %v449_v53 = vpack.c.bf16 %v137_v47, %v136_v46  ;;  %v138_v55 = vld [vmem:[#allocation9 + $0x70] sm:$0xff]  ;;  %v139_v56 = vld [vmem:[#allocation9 + $0x78] sm:$0xff] }
  0x56   :  { %468 = vmatpush3.bf16.msra.mxu0 %v465_v17  ;;  %438 = vmatprep.subr.bf16.mxu1 %v437_v22  ;;  %v481_v54 = vpack.c.bf16 %v121_v50, %v120_v49  ;;  %v122_v57 = vld [vmem:[#allocation8 + $0x70] sm:$0xff]  ;;  %v123_v58 = vld [vmem:[#allocation8 + $0x78] sm:$0xff]  ;;  %v93_v59 = vadd.f32 %v92_v51, %v86_v52  ;;  %v88_v60 = vld [vmem:[#allocation3 + $0x38] sm:$0xff]  ;;  %v453_v61 = vpack.c.bf16 %v139_v56, %v138_v55 }
  0x57   :  { %470 = vmatprep.subr.bf16.mxu0 %v469_v24  ;;  %v104_v48 = vmul.f32 0.25, %v91_v41  ;;  %v485_v62 = vpack.c.bf16 %v123_v58, %v122_v57  ;;  %v107_v1 = vld [vmem:[#allocation6 + $0x8] sm:$0xff] }
  0x58   :  { %v94_v63 = vadd.f32 %v93_v59, %v88_v60 }
  0x59   :  { %440 = vmatpush3.bf16.msra.mxu1 %v437_v22  ;;  %387 = vmatprep.mubr.f32.mxu1 %v104_v48 }
  0x5a   :  { %472 = vmatpush3.bf16.msra.mxu0 %v469_v24  ;;  %442 = vmatprep.subr.bf16.mxu1 %v441_v33  ;;  %v105_v0 = vmul.f32 0.25, %v94_v63 }
  0x5b   :  { %474 = vmatprep.subr.bf16.mxu0 %v473_v35 }
  0x5d   :  { %444 = vmatpush3.bf16.msra.mxu1 %v441_v33 }
  0x5e   :  { %476 = vmatpush3.bf16.msra.mxu0 %v473_v35  ;;  %446 = vmatprep.subr.bf16.mxu1 %v445_v44 }
  0x5f   :  { %478 = vmatprep.subr.bf16.mxu0 %v477_v45 }
  0x61   :  { %448 = vmatpush3.bf16.msra.mxu1 %v445_v44 }
  0x62   :  { %480 = vmatpush3.bf16.msra.mxu0 %v477_v45  ;;  %450 = vmatprep.subr.bf16.mxu1 %v449_v53 }
  0x63   :  { %482 = vmatprep.subr.bf16.mxu0 %v481_v54 }
  0x65   :  { %452 = vmatpush3.bf16.msra.mxu1 %v449_v53 }
  0x66   :  { %484 = vmatpush3.bf16.msra.mxu0 %v481_v54  ;;  %454 = vmatprep.subr.bf16.mxu1 %v453_v61 }
  0x67   :  { %486 = vmatprep.subr.bf16.mxu0 %v485_v62 }
  0x69   :  { %456 = vmatpush3.bf16.msra.mxu1 %v453_v61 }
  0x6a   :  { %488 = vmatpush3.bf16.msra.mxu0 %v485_v62 }
  0x6c   :  { %388 = vmatmul.mubr.f32.vlgmr.msra.gmra.mrb[0].mxu1 %v105_v0 }
  0x6d   :  { %423 = vmatmul.mubr.f32.vlgmr.msra.gmra.mrb[0].mxu0 %v107_v1 }
 0x13f   :  { %v389_v2 = vpop.f32.mrb[0].mxu1 }
 0x140   :  { %v424_v3 = vpop.f32.mrb[0].mxu0  ;;  %v206_v4 = vpop.f32.mrb[1].mxu1 }
 0x141   :  { %v287_v5 = vadd.f32 %v424_v3, %v389_v2  ;;  %v281_v6 = vpop.f32.mrb[1].mxu0 }
 0x142   :  { %v282_v7 = vadd.f32 %v281_v6, %v206_v4 }
 0x143   :  { %v291_v8 = vsub.f32 1.0, %v287_v5  ;;  %v295_v11 = vmul.f32 %v287_v5, %v105_v0 }
 0x144   :  { %v290_v9 = vsub.f32 1.0, %v282_v7  ;;  %v294_v13 = vmul.f32 %v282_v7, %v104_v48 }
 0x145   :  { %v293_v10 = vmul.f32 %v291_v8, %v107_v1 }
 0x146   :  { %v292_v12 = vmul.f32 %v290_v9, %v722_v32 }
 0x147   :  { %v297_v14 = vadd.f32 %v295_v11, %v293_v10 }
 0x148   :  { %v296_v15 = vadd.f32 %v294_v13, %v292_v12 }
 0x149   :  { %299 = vst [vmem:[#allocation11 + $0x8] sm:$0xff] %v297_v14 }
 0x14a   :  { %298 = vst [vmem:[#allocation11] sm:$0xff] %v296_v15 }
 0x14b   :  { %597 = shalt.err (!%p594_p8)
}
 0x14c   :  { %s598_s15 = scalar_lea.hbm %s745_s4, 256 }
 0x14d   :  { %p599_p9 = scmp.ne.s32.totalorder %s745_s4, %s598_s15  ;;  %p602_p10 = scmp.lt.u32.totalorder %s598_s15, %s745_s4 }
 0x14f   :  { %p604_p11 = pnand %p602_p10, %p599_p9 }
 0x151   :  { %607 = shalt.err (!%p604_p11)
}
 0x152   :  { %311 = dma.vmem_to_hbm [thread:$0]  %s306_s12, 256, %s745_s4, [#allocation5], %s618_s27, %s618_s27, %s619_s28  }
 0x153   :  { %614 = dma.done.wait [#allocation5], 256  }
 0x154   :  { %615 = vsyncadd [#allocation5], 4294967040 }
 0x155   :  { %315 = vsyncpa [#allocation4], 1 }
 0x156   :  { %316 = vsyncpa [#allocation7], 1 }
 0x157   :  { %317 = vsyncpa [#allocation10], 1 }
 0x158   :  { %318 = vsyncpa [#allocation5], 1 }

</bundles_post_ra>
